<compile_context>
chip_gen: v7x
topology: tpu7x:2x2x1
jax: 0.10.0
libtpu: 0.0.40
codegen_flags: <defaults>
</compile_context>

<pallas_src>
import jax
import jax.numpy as jnp
from jax.experimental import pallas as pl
from jax.experimental.pallas import tpu as pltpu


def _round_up(x: int, m: int) -> int:
    return (x + m - 1) // m * m


def _default_num_splits() -> int:
    """2 on dual-TensorCore chips (v7x) so megacore shards the batch across
    both cores; 1 on single-TC chips (v5e/v6e) to avoid a useless grid level."""
    try:
        kind = jax.devices()[0].device_kind.lower()
        if "v7" in kind or "7x" in kind:
            return 2
    except Exception:
        pass
    return 1


def _make_confusion_kernel(*, n_rows, bt, c, slab, tiles_per_split, needs_mask):
    n_slabs = bt // slab
    fold = slab // 8

    def kernel(x_ref, acc_ref):
        s = pl.program_id(0)
        i = pl.program_id(1)

        @pl.when(i == 0)
        def _init():
            acc_ref[...] = jnp.zeros_like(acc_ref)

        logical_tile = s * tiles_per_split + i
        row_base = logical_tile * bt

        if needs_mask:
            # Hoisted once per grid step (JAX does not CSE broadcast_in_dim).
            local_rows = jax.lax.broadcasted_iota(jnp.int32, (slab, 1), 0)

        def slab_contrib(start):
            xs = x_ref[pl.ds(start, slab), :].astype(jnp.float32)
            logs = jnp.log(xs + 1e-6)                        # EUP
            if needs_mask:
                rows = local_rows + (row_base + start)
                logs = jnp.where(rows < n_rows, logs, 0.0)   # cheap VPU select
            # Fold the slab rows onto the 8 resident sublane rows: the reshape
            # only splits the major axis (layout no-op) and the axis-0 sum is
            # pure VPU vreg adds — no XLU reduce, no scalar RMW.
            return jnp.sum(logs.reshape(fold, 8, c), axis=0)

        # Skip tiles lying entirely past the real batch (only the trailing
        # megacore shard of an uneven split produces them).
        @pl.when(row_base < n_rows)
        def _compute():
            if n_slabs == 1:
                acc_ref[...] += slab_contrib(0)
            else:
                def body(r, carry):
                    start = pl.multiple_of(r * slab, 8)
                    acc_ref[...] += slab_contrib(start)
                    return carry
                jax.lax.fori_loop(0, n_slabs, body, 0, unroll=2)

    return kernel


def confusion_loss(x: jax.Array, target=None, *,
                   max_block_bytes: int = 4 * 1024 * 1024,
                   num_splits: int | None = None) -> jax.Array:
    """x: [N, C] probabilities (any float dtype). Returns scalar f32 loss.
    `target` is unused (matches the PyTorch module signature)."""
    del target
    n, c = x.shape
    itemsize = jnp.dtype(x.dtype).itemsize

    # Batch tile sized by bytes (~4 MiB per input block).
    bt = max(16, (max_block_bytes // max(c * itemsize, 1)) // 16 * 16)
    bt = min(bt, _round_up(n, 16))

    # Streaming slab: log/accumulate `slab` rows at a time so the f32
    # intermediate stays within a handful of vregs.
    slab = min(bt, max(8, ((32 * 1024) // (4 * c)) // 8 * 8))
    if slab >= 16:
        slab = (slab // 16) * 16
    bt = max(slab, (bt // slab) * slab)

    num_tiles = pl.cdiv(n, bt)
    if num_splits is None:
        num_splits = _default_num_splits()
    num_splits = max(1, min(int(num_splits), num_tiles))
    tiles_per_split = pl.cdiv(num_tiles, num_splits)

    needs_mask = (n % bt) != 0  # ragged tail handled in-kernel (no jnp.pad)

    kernel = _make_confusion_kernel(
        n_rows=n, bt=bt, c=c, slab=slab,
        tiles_per_split=tiles_per_split, needs_mask=needs_mask)

    def x_index_map(s, i):
        # Clamp so a trailing fully-out-of-range logical tile (uneven megacore
        # shard) re-reads the last real tile instead of going OOB; its
        # contribution is skipped inside the kernel.
        return (jnp.minimum(s * tiles_per_split + i, num_tiles - 1), 0)

    partials = pl.pallas_call(
        kernel,
        out_shape=jax.ShapeDtypeStruct((num_splits * 8, c), jnp.float32),
        grid_spec=pltpu.PrefetchScalarGridSpec(
            num_scalar_prefetch=0,
            grid=(num_splits, tiles_per_split),
            in_specs=[pl.BlockSpec((bt, c), x_index_map)],
            out_specs=pl.BlockSpec((8, c), lambda s, i: (s, 0)),
        ),
        compiler_params=pltpu.CompilerParams(
            dimension_semantics=("parallel", "arbitrary"),
            vmem_limit_bytes=32 * 1024 * 1024,
        ),
        cost_estimate=pl.CostEstimate(
            flops=2 * n * c,
            transcendentals=n * c,
            bytes_accessed=n * c * itemsize + num_splits * 8 * c * 4,
        ),
    )(x)

    # Single tiny cross-lane reduce + scale/negate, outside the kernel.
    return -(jnp.sum(partials) / jnp.float32(c))


def confusion_loss_ref(x: jax.Array) -> jax.Array:
    """Pure-JAX reference mirroring the PyTorch forward."""
    log = jnp.log(x.astype(jnp.float32) + 1e-6)
    log_sum = jnp.sum(log, axis=1)
    normalised = log_sum / x.shape[1]
    return -jnp.sum(normalised, axis=0)


if __name__ == "__main__":
    key = jax.random.PRNGKey(0)
    k1, k2, k3 = jax.random.split(key, 3)

    # Base case: batch=16, classes=128 probabilities.
    x1 = jax.nn.softmax(jax.random.normal(k1, (16, 128), jnp.float32), axis=1)
    loss1 = jax.block_until_ready(confusion_loss(x1))
    ref1 = confusion_loss_ref(x1)
    assert jnp.allclose(loss1, ref1, rtol=1e-5, atol=1e-4), (loss1, ref1)

    # Ragged case (N and C not tile aligned) -> in-kernel tail masking path.
    x2 = jax.nn.softmax(jax.random.normal(k2, (37, 96), jnp.float32), axis=1)
    loss2 = jax.block_until_ready(confusion_loss(x2))
    ref2 = confusion_loss_ref(x2)
    assert jnp.allclose(loss2, ref2, rtol=1e-5, atol=1e-4), (loss2, ref2)

    # Multi-tile + streamed-slab + (on v7x) megacore split with clamped tail,
    # forced via a small block-byte budget so the test stays tiny.
    x3 = jax.nn.softmax(jax.random.normal(k3, (300, 256), jnp.float32), axis=1)
    loss3 = jax.block_until_ready(confusion_loss(x3, max_block_bytes=64 * 1024))
    ref3 = confusion_loss_ref(x3)
    assert jnp.allclose(loss3, ref3, rtol=1e-5, atol=1e-3), (loss3, ref3)

    print("KERNEL_OK")
</pallas_src>

<mosaic_0001>
module attributes {stable_mosaic.version = 11 : i64} {
  func.func @kernel(%arg0: i32, %arg1: i32, %arg2: memref<16x128xf32, #tpu.memory_space<vmem>>, %arg3: memref<8x128xf32, #tpu.memory_space<vmem>>) attributes {dimension_semantics = [#tpu.dimension_semantics<parallel>, #tpu.dimension_semantics<arbitrary>], iteration_bounds = array<i64: 1, 1>, scalar_prefetch = 0 : i64, scratch_operands = 0 : i64, tpu.core_type = #tpu.core_type<tc>, window_params = [{transform_indices = @transform_0, window_bounds = array<i64: 16, 128>}, {transform_indices = @transform_1, window_bounds = array<i64: 8, 128>}]} {
    %c0_i32 = arith.constant 0 : i32
    %0 = arith.cmpi eq, %arg1, %c0_i32 : i32
    %1 = arith.extui %0 : i1 to i32
    %c0_i32_0 = arith.constant 0 : i32
    %2 = arith.cmpi ne, %1, %c0_i32_0 : i32
    scf.if %2 {
      %cst = arith.constant 0.000000e+00 : f32
      %9 = vector.broadcast %cst : f32 to vector<8x128xf32>
      %c0 = arith.constant 0 : index
      %c0_3 = arith.constant 0 : index
      %10 = vector.load %arg3[%c0, %c0_3] : memref<8x128xf32, #tpu.memory_space<vmem>>, vector<8x128xf32>
      tpu.vector_store %arg3[%c0, %c0_3], %9 {strides = array<i32>} : memref<8x128xf32, #tpu.memory_space<vmem>>, vector<8x128xf32>,
    } else {
    }
    %c1_i32 = arith.constant 1 : i32
    %3 = arith.muli %arg0, %c1_i32 : i32
    %4 = arith.addi %3, %arg1 : i32
    %c16_i32 = arith.constant 16 : i32
    %5 = arith.muli %4, %c16_i32 : i32
    %c16_i32_1 = arith.constant 16 : i32
    %6 = arith.cmpi slt, %5, %c16_i32_1 : i32
    %7 = arith.extui %6 : i1 to i32
    %c0_i32_2 = arith.constant 0 : i32
    %8 = arith.cmpi ne, %7, %c0_i32_2 : i32
    scf.if %8 {
      %c0 = arith.constant 0 : index
      %c0_3 = arith.constant 0 : index
      %9 = vector.load %arg3[%c0, %c0_3] : memref<8x128xf32, #tpu.memory_space<vmem>>, vector<8x128xf32>
      %c0_4 = arith.constant 0 : index
      %c0_5 = arith.constant 0 : index
      %10 = vector.load %arg2[%c0_4, %c0_5] : memref<16x128xf32, #tpu.memory_space<vmem>>, vector<16x128xf32>
      %cst = arith.constant 9.99999997E-7 : f32
      %11 = vector.broadcast %cst : f32 to vector<16x128xf32>
      %12 = arith.addf %10, %11 : vector<16x128xf32>
      %13 = math.log %12 : vector<16x128xf32>
      %14 = vector.shape_cast %13 : vector<16x128xf32> to vector<2x8x128xf32>
      %cst_6 = arith.constant dense<0.000000e+00> : vector<8x128xf32>
      %15 = vector.multi_reduction <add>, %14, %cst_6 [0] : vector<2x8x128xf32> to vector<8x128xf32>
      %16 = arith.addf %9, %15 : vector<8x128xf32>
      %c0_7 = arith.constant 0 : index
      %c0_8 = arith.constant 0 : index
      %17 = vector.load %arg3[%c0_7, %c0_8] : memref<8x128xf32, #tpu.memory_space<vmem>>, vector<8x128xf32>
      tpu.vector_store %arg3[%c0_7, %c0_8], %16 {strides = array<i32>} : memref<8x128xf32, #tpu.memory_space<vmem>>, vector<8x128xf32>,
    } else {
    }
    return
  }
  func.func @transform_0(%arg0: i32, %arg1: i32) -> (i32, i32) {
    %c1_i32 = arith.constant 1 : i32
    %0 = arith.muli %arg0, %c1_i32 : i32
    %1 = arith.addi %0, %arg1 : i32
    %c0_i32 = arith.constant 0 : i32
    %2 = arith.minsi %1, %c0_i32 : i32
    %c0_i32_0 = arith.constant 0 : i32
    %c0_i32_1 = arith.constant 0 : i32
    return %2, %c0_i32_0 : i32, i32
  }
  func.func @transform_1(%arg0: i32, %arg1: i32) -> (i32, i32) {
    %c0_i32 = arith.constant 0 : i32
    %c0_i32_0 = arith.constant 0 : i32
    return %arg0, %c0_i32 : i32, i32
  }
}

</mosaic_0001>

<bundles_post_ra>
// kernel: tpu_custom_call.1
= control target key start
LH: loop header
LB: loop body
LE: loop exit
PB: predicated region body
PF: predicated region fallthrough
CT: control target
= control target key end

     0   :  { %6 = vsyncpa [#allocation3], 0  ;;  %s168_s0 = inlined_call_operand.hbm [shape: f32[16,128], index: 0, kind: input, shape index: {}]   ;;  %s169_s1 = inlined_call_operand.hbm [shape: f32[8,128], index: 1, kind: output, shape index: {}]  }
   0x1   :  { %7 = vsyncpa [#allocation4], 0  ;;  %s130_s6 = smov [#allocation2]   ;;  %s82_s10 = scalar_lea.hbm %s168_s0, 256 }
   0x2   :  { %s19_s7 = sshll.u32 %s130_s6, 4  ;;  %p83_p0 = scmp.ne.s32.totalorder %s168_s0, %s82_s10  ;;  %s20_s7 = int_to_ptr.vmem [resolvable:$true] %s19_s7 }
   0x3   :  { %p86_p1 = scmp.lt.u32.totalorder %s82_s10, %s168_s0 }
   0x5   :  { %p88_p2 = pnand %p86_p1, %p83_p0 }
   0x7   :  { %91 = shalt.err (!%p88_p2)
}
   0x8   :  { %s92_s15 = scalar_lea.vmem %s20_s7, 256  ;;  %p97_p4 = scmp.lt.s32.totalorder %s20_s7, %s20_s7 }
   0x9   :  { %p93_p3 = scmp.ne.s32.totalorder %s20_s7, %s92_s15  ;;  %p98_p5 = scmp.lt.s32.totalorder %s92_s15, %s92_s15 }
   0xb   :  { %p99_p6 = por %p98_p5, %p97_p4 }
   0xd   :  { %p100_p7 = pnand %p99_p6, %p93_p3 }
   0xf   :  { %103 = shalt.err (!%p100_p7)
}
  0x10   :  { %s131_s16 = smov 128   ;;  %s132_s17 = smov 8  }
  0x11   :  { %25 = dma.hbm_to_vmem [thread:$0]  %s168_s0, 256, %s20_s7, [#allocation3], %s131_s16, %s131_s16, %s132_s17  }
  0x12   :  { %126 = dma.done.wait [#allocation3], 256  }
  0x13   :  { %127 = vsyncadd [#allocation3], 4294967040  ;;  %v45_v0 = vld [vmem:[#allocation2] sm:$0xff]  ;;  %v46_v1 = vld [vmem:[#allocation2 + $0x8] sm:$0xff]  ;;  %s133_s20 = smov [#allocation5]  }
  0x14   :  { %v47_v2 = vadd.f32 1e-06, %v45_v0  ;;  %v48_v3 = vadd.f32 1e-06, %v46_v1  ;;  %s62_s21 = sshll.u32 %s133_s20, 4  ;;  %s63_s21 = int_to_ptr.vmem [resolvable:$true] %s62_s21 }
  0x15   :  { %s104_s22 = scalar_lea.vmem %s63_s21, 128  ;;  %p109_p9 = scmp.lt.s32.totalorder %s63_s21, %s63_s21 }
  0x16   :  { %78 = vlog2.f32 %v47_v2  ;;  %p105_p8 = scmp.ne.s32.totalorder %s63_s21, %s104_s22  ;;  %p110_p10 = scmp.lt.s32.totalorder %s104_s22, %s104_s22 }
  0x17   :  { %80 = vlog2.f32 %v48_v3 }
  0x18   :  { %p111_p11 = por %p110_p10, %p109_p9 }
  0x1a   :  { %p112_p12 = pnand %p111_p11, %p105_p8 }
  0x20   :  { %v79_v4 = vpop.eup %78 }
  0x21   :  { %v81_v5 = vpop.eup %80  ;;  %v50_v6 = vmul.f32 0.6931472, %v79_v4 }
  0x22   :  { %v52_v7 = vmul.f32 0.6931472, %v81_v5 }
  0x24   :  { %v53_v8 = vadd.f32 %v52_v7, %v50_v6 }
  0x26   :  { %55 = vst [vmem:[#allocation5] sm:$0xff] %v53_v8 }
  0x27   :  { %115 = shalt.err (!%p112_p12)
}
  0x28   :  { %s116_s24 = scalar_lea.hbm %s169_s1, 128 }
  0x29   :  { %p117_p13 = scmp.ne.s32.totalorder %s169_s1, %s116_s24  ;;  %p120_p0 = scmp.lt.u32.totalorder %s116_s24, %s169_s1 }
  0x2b   :  { %p122_p1 = pnand %p120_p0, %p117_p13 }
  0x2d   :  { %125 = shalt.err (!%p122_p1)
}
  0x2e   :  { %65 = dma.vmem_to_hbm [thread:$0]  %s63_s21, 128, %s169_s1, [#allocation4]  }
  0x2f   :  { %128 = dma.done.wait [#allocation4], 128  }
  0x30   :  { %129 = vsyncadd [#allocation4], 4294967168 }
  0x31   :  { %69 = vsyncpa [#allocation3], 1 }
  0x32   :  { %70 = vsyncpa [#allocation4], 1 }

</bundles_post_ra>
